<compile_context>
chip_gen: v7x
topology: tpu7x:2x2x1
jax: 0.10.0
libtpu: 0.0.40
codegen_flags: <defaults>
</compile_context>

<pallas_src>
import jax
import jax.numpy as jnp
from jax.experimental import pallas as pl
from jax.experimental.pallas import tpu as pltpu

LANES = 128  # lane width of a vreg


def mlp_kernel(x_ref, w1_ref, b1_ref, w2_ref, b2_ref, o_ref):
    # x_ref : (2, TR, 128) f32 VMEM  -- feature-major, batch dense on (sublane, lane)
    # w1_ref: (2, 10) f32 SMEM   b1_ref: (10,) SMEM
    # w2_ref: (10,)   f32 SMEM   b2_ref: (1,)  SMEM
    # o_ref : (TR, 128) f32 VMEM
    x0 = x_ref[0]                      # (TR, 128), fully dense vregs
    x1 = x_ref[1]
    n_hidden = w1_ref.shape[1]         # 10, static

    acc = jnp.zeros_like(x0) + b2_ref[0]
    for j in range(n_hidden):          # static unroll: pure VPU scalar*vector FMAs
        h = w1_ref[0, j] * x0 + w1_ref[1, j] * x1 + b1_ref[j]
        h = jnp.maximum(h, 0.0)        # ReLU
        acc = acc + w2_ref[j] * h

    # sigmoid(y) == 0.5 * tanh(y/2) + 0.5 : single EUP op, no VALU divide.
    o_ref[...] = 0.5 * jnp.tanh(0.5 * acc) + 0.5


def mlp_forward(x, w1, b1, w2, b2, *, tile_rows=64):
    """x: (B, 2) f32. Returns (B, 1) f32 = sigmoid(relu(x@w1+b1)@w2+b2)."""
    B = x.shape[0]
    rows = pl.cdiv(B, LANES)                      # batch rows of 128 elements
    tr = min(int(tile_rows), 8 * int(pl.cdiv(rows, 8)))
    tr = max(8, (tr // 8) * 8)                    # tile rows, multiple of 8
    rows_pad = int(pl.cdiv(rows, tr)) * tr
    b_pad = rows_pad * LANES

    # Wrapper-side layout plumbing: (B, 2) -> (2, rows_pad, 128), zero padded.
    xt = jnp.zeros((2, b_pad), jnp.float32).at[:, :B].set(x.T.astype(jnp.float32))
    xt = xt.reshape(2, rows_pad, LANES)

    smem = pl.BlockSpec(memory_space=pltpu.MemorySpace.SMEM)
    out = pl.pallas_call(
        mlp_kernel,
        out_shape=jax.ShapeDtypeStruct((rows_pad, LANES), jnp.float32),
        grid=(rows_pad // tr,),
        in_specs=[
            pl.BlockSpec((2, tr, LANES), lambda i: (0, i, 0)),  # streamed batch tile
            smem, smem, smem, smem,                             # resident params
        ],
        out_specs=pl.BlockSpec((tr, LANES), lambda i: (i, 0)),  # lane-dense output
        compiler_params=pltpu.CompilerParams(
            dimension_semantics=("parallel",)),
    )(xt, w1, b1, w2, b2)

    return out.reshape(b_pad)[:B].reshape(B, 1)


def init_params(key):
    # Mimics nn.Linear uniform(-1/sqrt(fan_in), +1/sqrt(fan_in)) init.
    k1, k2, k3, k4 = jax.random.split(key, 4)
    lim1 = 1.0 / jnp.sqrt(2.0)
    lim2 = 1.0 / jnp.sqrt(10.0)
    w1 = jax.random.uniform(k1, (2, 10), jnp.float32, -lim1, lim1)  # (in, out) = W1^T
    b1 = jax.random.uniform(k2, (10,), jnp.float32, -lim1, lim1)
    w2 = jax.random.uniform(k3, (10,), jnp.float32, -lim2, lim2)    # fc2 weight column
    b2 = jax.random.uniform(k4, (1,), jnp.float32, -lim2, lim2)
    return w1, b1, w2, b2


if __name__ == "__main__":
    key = jax.random.PRNGKey(0)
    kx, kp = jax.random.split(key)
    w1, b1, w2, b2 = init_params(kp)

    # Two configs: tiny batch (single grid step) and a larger batch with a
    # small tile so the pipelined/parallel grid takes >1 step.
    for batch, tr in ((8, 64), (2048, 8)):
        x = jax.random.normal(jax.random.fold_in(kx, batch), (batch, 2), jnp.float32)
        out = jax.block_until_ready(mlp_forward(x, w1, b1, w2, b2, tile_rows=tr))

        # Pure-JAX reference (same math as the PyTorch module).
        h_ref = jnp.maximum(x @ w1 + b1, 0.0)
        y_ref = jax.nn.sigmoid(h_ref @ w2[:, None] + b2)
        assert out.shape == (batch, 1)
        assert jnp.allclose(out, y_ref, atol=1e-4, rtol=1e-4), float(
            jnp.max(jnp.abs(out - y_ref)))

    print("KERNEL_OK")
</pallas_src>

<mosaic_0001>
module attributes {stable_mosaic.version = 11 : i64} {
  func.func @mlp_kernel(%arg0: i32, %arg1: memref<2x8x128xf32, #tpu.memory_space<vmem>>, %arg2: memref<2x10xf32, #tpu.memory_space<smem>>, %arg3: memref<10xf32, #tpu.memory_space<smem>>, %arg4: memref<10xf32, #tpu.memory_space<smem>>, %arg5: memref<1xf32, #tpu.memory_space<smem>>, %arg6: memref<8x128xf32, #tpu.memory_space<vmem>>) attributes {dimension_semantics = [#tpu.dimension_semantics<parallel>], iteration_bounds = array<i64: 1>, scalar_prefetch = 0 : i64, scratch_operands = 0 : i64, tpu.core_type = #tpu.core_type<tc>, window_params = [{transform_indices = @transform_0, window_bounds = array<i64: 2, 8, 128>}, {transform_indices = @transform_1, window_bounds = array<i64: 2, 10>}, {transform_indices = @transform_2, window_bounds = array<i64: 10>}, {transform_indices = @transform_3, window_bounds = array<i64: 10>}, {transform_indices = @transform_4, window_bounds = array<i64: 1>}, {transform_indices = @transform_5, window_bounds = array<i64: 8, 128>}]} {
    %c0 = arith.constant 0 : index
    %c0_0 = arith.constant 0 : index
    %c0_1 = arith.constant 0 : index
    %0 = vector.load %arg1[%c0, %c0_0, %c0_1] : memref<2x8x128xf32, #tpu.memory_space<vmem>>, vector<1x8x128xf32>
    %1 = vector.shape_cast %0 : vector<1x8x128xf32> to vector<8x128xf32>
    %c1 = arith.constant 1 : index
    %c0_2 = arith.constant 0 : index
    %c0_3 = arith.constant 0 : index
    %2 = vector.load %arg1[%c1, %c0_2, %c0_3] : memref<2x8x128xf32, #tpu.memory_space<vmem>>, vector<1x8x128xf32>
    %3 = vector.shape_cast %2 : vector<1x8x128xf32> to vector<8x128xf32>
    %cst = arith.constant 0.000000e+00 : f32
    %4 = vector.broadcast %cst : f32 to vector<8x128xf32>
    %c0_4 = arith.constant 0 : index
    %5 = memref.load %arg5[%c0_4] : memref<1xf32, #tpu.memory_space<smem>>
    %6 = vector.broadcast %5 : f32 to vector<8x128xf32>
    %7 = arith.addf %4, %6 : vector<8x128xf32>
    %c0_5 = arith.constant 0 : index
    %c0_6 = arith.constant 0 : index
    %8 = memref.load %arg2[%c0_5, %c0_6] : memref<2x10xf32, #tpu.memory_space<smem>>
    %9 = vector.broadcast %8 : f32 to vector<8x128xf32>
    %10 = arith.mulf %9, %1 : vector<8x128xf32>
    %c1_7 = arith.constant 1 : index
    %c0_8 = arith.constant 0 : index
    %11 = memref.load %arg2[%c1_7, %c0_8] : memref<2x10xf32, #tpu.memory_space<smem>>
    %12 = vector.broadcast %11 : f32 to vector<8x128xf32>
    %13 = arith.mulf %12, %3 : vector<8x128xf32>
    %14 = arith.addf %10, %13 : vector<8x128xf32>
    %c0_9 = arith.constant 0 : index
    %15 = memref.load %arg3[%c0_9] : memref<10xf32, #tpu.memory_space<smem>>
    %16 = vector.broadcast %15 : f32 to vector<8x128xf32>
    %17 = arith.addf %14, %16 : vector<8x128xf32>
    %cst_10 = arith.constant 0.000000e+00 : f32
    %18 = vector.broadcast %cst_10 : f32 to vector<8x128xf32>
    %19 = arith.maximumf %17, %18 : vector<8x128xf32>
    %c0_11 = arith.constant 0 : index
    %20 = memref.load %arg4[%c0_11] : memref<10xf32, #tpu.memory_space<smem>>
    %21 = vector.broadcast %20 : f32 to vector<8x128xf32>
    %22 = arith.mulf %21, %19 : vector<8x128xf32>
    %23 = arith.addf %7, %22 : vector<8x128xf32>
    %c0_12 = arith.constant 0 : index
    %c1_13 = arith.constant 1 : index
    %24 = memref.load %arg2[%c0_12, %c1_13] : memref<2x10xf32, #tpu.memory_space<smem>>
    %25 = vector.broadcast %24 : f32 to vector<8x128xf32>
    %26 = arith.mulf %25, %1 : vector<8x128xf32>
    %c1_14 = arith.constant 1 : index
    %c1_15 = arith.constant 1 : index
    %27 = memref.load %arg2[%c1_14, %c1_15] : memref<2x10xf32, #tpu.memory_space<smem>>
    %28 = vector.broadcast %27 : f32 to vector<8x128xf32>
    %29 = arith.mulf %28, %3 : vector<8x128xf32>
    %30 = arith.addf %26, %29 : vector<8x128xf32>
    %c1_16 = arith.constant 1 : index
    %31 = memref.load %arg3[%c1_16] : memref<10xf32, #tpu.memory_space<smem>>
    %32 = vector.broadcast %31 : f32 to vector<8x128xf32>
    %33 = arith.addf %30, %32 : vector<8x128xf32>
    %cst_17 = arith.constant 0.000000e+00 : f32
    %34 = vector.broadcast %cst_17 : f32 to vector<8x128xf32>
    %35 = arith.maximumf %33, %34 : vector<8x128xf32>
    %c1_18 = arith.constant 1 : index
    %36 = memref.load %arg4[%c1_18] : memref<10xf32, #tpu.memory_space<smem>>
    %37 = vector.broadcast %36 : f32 to vector<8x128xf32>
    %38 = arith.mulf %37, %35 : vector<8x128xf32>
    %39 = arith.addf %23, %38 : vector<8x128xf32>
    %c0_19 = arith.constant 0 : index
    %c2 = arith.constant 2 : index
    %40 = memref.load %arg2[%c0_19, %c2] : memref<2x10xf32, #tpu.memory_space<smem>>
    %41 = vector.broadcast %40 : f32 to vector<8x128xf32>
    %42 = arith.mulf %41, %1 : vector<8x128xf32>
    %c1_20 = arith.constant 1 : index
    %c2_21 = arith.constant 2 : index
    %43 = memref.load %arg2[%c1_20, %c2_21] : memref<2x10xf32, #tpu.memory_space<smem>>
    %44 = vector.broadcast %43 : f32 to vector<8x128xf32>
    %45 = arith.mulf %44, %3 : vector<8x128xf32>
    %46 = arith.addf %42, %45 : vector<8x128xf32>
    %c2_22 = arith.constant 2 : index
    %47 = memref.load %arg3[%c2_22] : memref<10xf32, #tpu.memory_space<smem>>
    %48 = vector.broadcast %47 : f32 to vector<8x128xf32>
    %49 = arith.addf %46, %48 : vector<8x128xf32>
    %cst_23 = arith.constant 0.000000e+00 : f32
    %50 = vector.broadcast %cst_23 : f32 to vector<8x128xf32>
    %51 = arith.maximumf %49, %50 : vector<8x128xf32>
    %c2_24 = arith.constant 2 : index
    %52 = memref.load %arg4[%c2_24] : memref<10xf32, #tpu.memory_space<smem>>
    %53 = vector.broadcast %52 : f32 to vector<8x128xf32>
    %54 = arith.mulf %53, %51 : vector<8x128xf32>
    %55 = arith.addf %39, %54 : vector<8x128xf32>
    %c0_25 = arith.constant 0 : index
    %c3 = arith.constant 3 : index
    %56 = memref.load %arg2[%c0_25, %c3] : memref<2x10xf32, #tpu.memory_space<smem>>
    %57 = vector.broadcast %56 : f32 to vector<8x128xf32>
    %58 = arith.mulf %57, %1 : vector<8x128xf32>
    %c1_26 = arith.constant 1 : index
    %c3_27 = arith.constant 3 : index
    %59 = memref.load %arg2[%c1_26, %c3_27] : memref<2x10xf32, #tpu.memory_space<smem>>
    %60 = vector.broadcast %59 : f32 to vector<8x128xf32>
    %61 = arith.mulf %60, %3 : vector<8x128xf32>
    %62 = arith.addf %58, %61 : vector<8x128xf32>
    %c3_28 = arith.constant 3 : index
    %63 = memref.load %arg3[%c3_28] : memref<10xf32, #tpu.memory_space<smem>>
    %64 = vector.broadcast %63 : f32 to vector<8x128xf32>
    %65 = arith.addf %62, %64 : vector<8x128xf32>
    %cst_29 = arith.constant 0.000000e+00 : f32
    %66 = vector.broadcast %cst_29 : f32 to vector<8x128xf32>
    %67 = arith.maximumf %65, %66 : vector<8x128xf32>
    %c3_30 = arith.constant 3 : index
    %68 = memref.load %arg4[%c3_30] : memref<10xf32, #tpu.memory_space<smem>>
    %69 = vector.broadcast %68 : f32 to vector<8x128xf32>
    %70 = arith.mulf %69, %67 : vector<8x128xf32>
    %71 = arith.addf %55, %70 : vector<8x128xf32>
    %c0_31 = arith.constant 0 : index
    %c4 = arith.constant 4 : index
    %72 = memref.load %arg2[%c0_31, %c4] : memref<2x10xf32, #tpu.memory_space<smem>>
    %73 = vector.broadcast %72 : f32 to vector<8x128xf32>
    %74 = arith.mulf %73, %1 : vector<8x128xf32>
    %c1_32 = arith.constant 1 : index
    %c4_33 = arith.constant 4 : index
    %75 = memref.load %arg2[%c1_32, %c4_33] : memref<2x10xf32, #tpu.memory_space<smem>>
    %76 = vector.broadcast %75 : f32 to vector<8x128xf32>
    %77 = arith.mulf %76, %3 : vector<8x128xf32>
    %78 = arith.addf %74, %77 : vector<8x128xf32>
    %c4_34 = arith.constant 4 : index
    %79 = memref.load %arg3[%c4_34] : memref<10xf32, #tpu.memory_space<smem>>
    %80 = vector.broadcast %79 : f32 to vector<8x128xf32>
    %81 = arith.addf %78, %80 : vector<8x128xf32>
    %cst_35 = arith.constant 0.000000e+00 : f32
    %82 = vector.broadcast %cst_35 : f32 to vector<8x128xf32>
    %83 = arith.maximumf %81, %82 : vector<8x128xf32>
    %c4_36 = arith.constant 4 : index
    %84 = memref.load %arg4[%c4_36] : memref<10xf32, #tpu.memory_space<smem>>
    %85 = vector.broadcast %84 : f32 to vector<8x128xf32>
    %86 = arith.mulf %85, %83 : vector<8x128xf32>
    %87 = arith.addf %71, %86 : vector<8x128xf32>
    %c0_37 = arith.constant 0 : index
    %c5 = arith.constant 5 : index
    %88 = memref.load %arg2[%c0_37, %c5] : memref<2x10xf32, #tpu.memory_space<smem>>
    %89 = vector.broadcast %88 : f32 to vector<8x128xf32>
    %90 = arith.mulf %89, %1 : vector<8x128xf32>
    %c1_38 = arith.constant 1 : index
    %c5_39 = arith.constant 5 : index
    %91 = memref.load %arg2[%c1_38, %c5_39] : memref<2x10xf32, #tpu.memory_space<smem>>
    %92 = vector.broadcast %91 : f32 to vector<8x128xf32>
    %93 = arith.mulf %92, %3 : vector<8x128xf32>
    %94 = arith.addf %90, %93 : vector<8x128xf32>
    %c5_40 = arith.constant 5 : index
    %95 = memref.load %arg3[%c5_40] : memref<10xf32, #tpu.memory_space<smem>>
    %96 = vector.broadcast %95 : f32 to vector<8x128xf32>
    %97 = arith.addf %94, %96 : vector<8x128xf32>
    %cst_41 = arith.constant 0.000000e+00 : f32
    %98 = vector.broadcast %cst_41 : f32 to vector<8x128xf32>
    %99 = arith.maximumf %97, %98 : vector<8x128xf32>
    %c5_42 = arith.constant 5 : index
    %100 = memref.load %arg4[%c5_42] : memref<10xf32, #tpu.memory_space<smem>>
    %101 = vector.broadcast %100 : f32 to vector<8x128xf32>
    %102 = arith.mulf %101, %99 : vector<8x128xf32>
    %103 = arith.addf %87, %102 : vector<8x128xf32>
    %c0_43 = arith.constant 0 : index
    %c6 = arith.constant 6 : index
    %104 = memref.load %arg2[%c0_43, %c6] : memref<2x10xf32, #tpu.memory_space<smem>>
    %105 = vector.broadcast %104 : f32 to vector<8x128xf32>
    %106 = arith.mulf %105, %1 : vector<8x128xf32>
    %c1_44 = arith.constant 1 : index
    %c6_45 = arith.constant 6 : index
    %107 = memref.load %arg2[%c1_44, %c6_45] : memref<2x10xf32, #tpu.memory_space<smem>>
    %108 = vector.broadcast %107 : f32 to vector<8x128xf32>
    %109 = arith.mulf %108, %3 : vector<8x128xf32>
    %110 = arith.addf %106, %109 : vector<8x128xf32>
    %c6_46 = arith.constant 6 : index
    %111 = memref.load %arg3[%c6_46] : memref<10xf32, #tpu.memory_space<smem>>
    %112 = vector.broadcast %111 : f32 to vector<8x128xf32>
    %113 = arith.addf %110, %112 : vector<8x128xf32>
    %cst_47 = arith.constant 0.000000e+00 : f32
    %114 = vector.broadcast %cst_47 : f32 to vector<8x128xf32>
    %115 = arith.maximumf %113, %114 : vector<8x128xf32>
    %c6_48 = arith.constant 6 : index
    %116 = memref.load %arg4[%c6_48] : memref<10xf32, #tpu.memory_space<smem>>
    %117 = vector.broadcast %116 : f32 to vector<8x128xf32>
    %118 = arith.mulf %117, %115 : vector<8x128xf32>
    %119 = arith.addf %103, %118 : vector<8x128xf32>
    %c0_49 = arith.constant 0 : index
    %c7 = arith.constant 7 : index
    %120 = memref.load %arg2[%c0_49, %c7] : memref<2x10xf32, #tpu.memory_space<smem>>
    %121 = vector.broadcast %120 : f32 to vector<8x128xf32>
    %122 = arith.mulf %121, %1 : vector<8x128xf32>
    %c1_50 = arith.constant 1 : index
    %c7_51 = arith.constant 7 : index
    %123 = memref.load %arg2[%c1_50, %c7_51] : memref<2x10xf32, #tpu.memory_space<smem>>
    %124 = vector.broadcast %123 : f32 to vector<8x128xf32>
    %125 = arith.mulf %124, %3 : vector<8x128xf32>
    %126 = arith.addf %122, %125 : vector<8x128xf32>
    %c7_52 = arith.constant 7 : index
    %127 = memref.load %arg3[%c7_52] : memref<10xf32, #tpu.memory_space<smem>>
    %128 = vector.broadcast %127 : f32 to vector<8x128xf32>
    %129 = arith.addf %126, %128 : vector<8x128xf32>
    %cst_53 = arith.constant 0.000000e+00 : f32
    %130 = vector.broadcast %cst_53 : f32 to vector<8x128xf32>
    %131 = arith.maximumf %129, %130 : vector<8x128xf32>
    %c7_54 = arith.constant 7 : index
    %132 = memref.load %arg4[%c7_54] : memref<10xf32, #tpu.memory_space<smem>>
    %133 = vector.broadcast %132 : f32 to vector<8x128xf32>
    %134 = arith.mulf %133, %131 : vector<8x128xf32>
    %135 = arith.addf %119, %134 : vector<8x128xf32>
    %c0_55 = arith.constant 0 : index
    %c8 = arith.constant 8 : index
    %136 = memref.load %arg2[%c0_55, %c8] : memref<2x10xf32, #tpu.memory_space<smem>>
    %137 = vector.broadcast %136 : f32 to vector<8x128xf32>
    %138 = arith.mulf %137, %1 : vector<8x128xf32>
    %c1_56 = arith.constant 1 : index
    %c8_57 = arith.constant 8 : index
    %139 = memref.load %arg2[%c1_56, %c8_57] : memref<2x10xf32, #tpu.memory_space<smem>>
    %140 = vector.broadcast %139 : f32 to vector<8x128xf32>
    %141 = arith.mulf %140, %3 : vector<8x128xf32>
    %142 = arith.addf %138, %141 : vector<8x128xf32>
    %c8_58 = arith.constant 8 : index
    %143 = memref.load %arg3[%c8_58] : memref<10xf32, #tpu.memory_space<smem>>
    %144 = vector.broadcast %143 : f32 to vector<8x128xf32>
    %145 = arith.addf %142, %144 : vector<8x128xf32>
    %cst_59 = arith.constant 0.000000e+00 : f32
    %146 = vector.broadcast %cst_59 : f32 to vector<8x128xf32>
    %147 = arith.maximumf %145, %146 : vector<8x128xf32>
    %c8_60 = arith.constant 8 : index
    %148 = memref.load %arg4[%c8_60] : memref<10xf32, #tpu.memory_space<smem>>
    %149 = vector.broadcast %148 : f32 to vector<8x128xf32>
    %150 = arith.mulf %149, %147 : vector<8x128xf32>
    %151 = arith.addf %135, %150 : vector<8x128xf32>
    %c0_61 = arith.constant 0 : index
    %c9 = arith.constant 9 : index
    %152 = memref.load %arg2[%c0_61, %c9] : memref<2x10xf32, #tpu.memory_space<smem>>
    %153 = vector.broadcast %152 : f32 to vector<8x128xf32>
    %154 = arith.mulf %153, %1 : vector<8x128xf32>
    %c1_62 = arith.constant 1 : index
    %c9_63 = arith.constant 9 : index
    %155 = memref.load %arg2[%c1_62, %c9_63] : memref<2x10xf32, #tpu.memory_space<smem>>
    %156 = vector.broadcast %155 : f32 to vector<8x128xf32>
    %157 = arith.mulf %156, %3 : vector<8x128xf32>
    %158 = arith.addf %154, %157 : vector<8x128xf32>
    %c9_64 = arith.constant 9 : index
    %159 = memref.load %arg3[%c9_64] : memref<10xf32, #tpu.memory_space<smem>>
    %160 = vector.broadcast %159 : f32 to vector<8x128xf32>
    %161 = arith.addf %158, %160 : vector<8x128xf32>
    %cst_65 = arith.constant 0.000000e+00 : f32
    %162 = vector.broadcast %cst_65 : f32 to vector<8x128xf32>
    %163 = arith.maximumf %161, %162 : vector<8x128xf32>
    %c9_66 = arith.constant 9 : index
    %164 = memref.load %arg4[%c9_66] : memref<10xf32, #tpu.memory_space<smem>>
    %165 = vector.broadcast %164 : f32 to vector<8x128xf32>
    %166 = arith.mulf %165, %163 : vector<8x128xf32>
    %167 = arith.addf %151, %166 : vector<8x128xf32>
    %cst_67 = arith.constant 5.000000e-01 : f32
    %168 = vector.broadcast %cst_67 : f32 to vector<8x128xf32>
    %169 = arith.mulf %168, %167 : vector<8x128xf32>
    %170 = math.tanh %169 : vector<8x128xf32>
    %cst_68 = arith.constant 5.000000e-01 : f32
    %171 = vector.broadcast %cst_68 : f32 to vector<8x128xf32>
    %172 = arith.mulf %171, %170 : vector<8x128xf32>
    %cst_69 = arith.constant 5.000000e-01 : f32
    %173 = vector.broadcast %cst_69 : f32 to vector<8x128xf32>
    %174 = arith.addf %172, %173 : vector<8x128xf32>
    %c0_70 = arith.constant 0 : index
    %c0_71 = arith.constant 0 : index
    %175 = vector.load %arg6[%c0_70, %c0_71] : memref<8x128xf32, #tpu.memory_space<vmem>>, vector<8x128xf32>
    tpu.vector_store %arg6[%c0_70, %c0_71], %174 {strides = array<i32>} : memref<8x128xf32, #tpu.memory_space<vmem>>, vector<8x128xf32>,
    return
  }
  func.func @transform_0(%arg0: i32) -> (i32, i32, i32) {
    %c0_i32 = arith.constant 0 : i32
    %c0_i32_0 = arith.constant 0 : i32
    %c0_i32_1 = arith.constant 0 : i32
    return %c0_i32, %arg0, %c0_i32_0 : i32, i32, i32
  }
  func.func @transform_1(%arg0: i32) -> (i32, i32) {
    %c0_i32 = arith.constant 0 : i32
    %c0_i32_0 = arith.constant 0 : i32
    %c0_i32_1 = arith.constant 0 : i32
    return %c0_i32, %c0_i32_0 : i32, i32
  }
  func.func @transform_2(%arg0: i32) -> i32 {
    %c0_i32 = arith.constant 0 : i32
    %c0_i32_0 = arith.constant 0 : i32
    return %c0_i32 : i32
  }
  func.func @transform_3(%arg0: i32) -> i32 {
    %c0_i32 = arith.constant 0 : i32
    %c0_i32_0 = arith.constant 0 : i32
    return %c0_i32 : i32
  }
  func.func @transform_4(%arg0: i32) -> i32 {
    %c0_i32 = arith.constant 0 : i32
    %c0_i32_0 = arith.constant 0 : i32
    return %c0_i32 : i32
  }
  func.func @transform_5(%arg0: i32) -> (i32, i32) {
    %c0_i32 = arith.constant 0 : i32
    %c0_i32_0 = arith.constant 0 : i32
    return %arg0, %c0_i32 : i32, i32
  }
}

</mosaic_0001>

<bundles_post_ra>
// kernel: tpu_custom_call.1
= control target key start
LH: loop header
LB: loop body
LE: loop exit
PB: predicated region body
PF: predicated region fallthrough
CT: control target
= control target key end

     0   :  { %11 = vsyncpa [#allocation4], 0  ;;  %s586_s0 = inlined_call_operand.hbm [shape: f32[2,8,128], index: 0, kind: input, shape index: {}]   ;;  %s587_s1 = inlined_call_operand.vmem [shape: f32[2,10], index: 1, kind: input, shape index: {}]   ;;  %s588_s2 = inlined_call_operand.vmem [shape: f32[10], index: 2, kind: input, shape index: {}]   ;;  %s589_s3 = inlined_call_operand.vmem [shape: f32[10], index: 3, kind: input, shape index: {}]   ;;  %s590_s4 = inlined_call_operand.<no memory space> [shape: f32[1], index: 4, kind: input, shape index: {}]   ;;  %s591_s5 = inlined_call_operand.hbm [shape: f32[8,128], index: 5, kind: output, shape index: {}]  }
   0x1   :  { %12 = vsyncpa [#allocation6], 0 }
   0x2   :  { %13 = vsyncpa [#allocation9], 0  ;;  %s43_s20 = sshll.u32 %s588_s2, 4  ;;  %s44_s20 = int_to_ptr.vmem [resolvable:$true] %s43_s20 }
   0x3   :  { %14 = vsyncpa [#allocation5], 0  ;;  %s296_s21 = scalar_lea.vmem %s44_s20, 16  ;;  %p301_p1 = scmp.lt.s32.totalorder %s44_s20, %s44_s20 }
   0x4   :  { %p297_p0 = scmp.ne.s32.totalorder %s44_s20, %s296_s21  ;;  %p302_p2 = scmp.lt.s32.totalorder %s296_s21, %s296_s21 }
   0x6   :  { %p303_p3 = por %p302_p2, %p301_p1 }
   0x8   :  { %p304_p4 = pnand %p303_p3, %p297_p0 }
   0xa   :  { %307 = shalt.err (!%p304_p4)
}
   0xb   :  { %s384_s22 = smov [#allocation8]   ;;  %s385_s23 = smov [#allocation3]  }
   0xc   :  { %46 = dma.vmem_to_smem %s44_s20, 16, %s384_s22, [#allocation9]  }
   0xd   :  { %s20_s24 = sshll.u32 %s385_s23, 4  ;;  %s308_s27 = scalar_lea.hbm %s586_s0, 256  ;;  %s21_s24 = int_to_ptr.vmem [resolvable:$true] %s20_s24 }
   0xe   :  { %p309_p5 = scmp.ne.s32.totalorder %s586_s0, %s308_s27  ;;  %p312_p6 = scmp.lt.u32.totalorder %s308_s27, %s586_s0 }
  0x10   :  { %p314_p7 = pnand %p312_p6, %p309_p5 }
  0x12   :  { %317 = shalt.err (!%p314_p7)
}
  0x13   :  { %s318_s6 = scalar_lea.vmem %s21_s24, 256  ;;  %p323_p9 = scmp.lt.s32.totalorder %s21_s24, %s21_s24 }
  0x14   :  { %p319_p8 = scmp.ne.s32.totalorder %s21_s24, %s318_s6  ;;  %p324_p10 = scmp.lt.s32.totalorder %s318_s6, %s318_s6 }
  0x16   :  { %p325_p11 = por %p324_p10, %p323_p9 }
  0x18   :  { %p326_p12 = pnand %p325_p11, %p319_p8 }
  0x1a   :  { %329 = shalt.err (!%p326_p12)
}
  0x1b   :  { %s386_s7 = smov 128   ;;  %s387_s8 = smov 8  }
  0x1c   :  { %26 = dma.hbm_to_vmem [thread:$0]  %s586_s0, 256, %s21_s24, [#allocation4], %s386_s7, %s386_s7, %s387_s8  }
  0x1d   :  { %s33_s13 = sshll.u32 %s587_s1, 4  ;;  %s53_s16 = sshll.u32 %s589_s3, 4  ;;  %s34_s13 = int_to_ptr.vmem [resolvable:$true] %s33_s13  ;;  %s54_s16 = int_to_ptr.vmem [resolvable:$true] %s53_s16 }
  0x1e   :  { %s330_s17 = scalar_lea.vmem %s34_s13, 32  ;;  %p335_p0 = scmp.lt.s32.totalorder %s34_s13, %s34_s13 }
  0x1f   :  { %p331_p13 = scmp.ne.s32.totalorder %s34_s13, %s330_s17  ;;  %p336_p1 = scmp.lt.s32.totalorder %s330_s17, %s330_s17 }
  0x21   :  { %p337_p2 = por %p336_p1, %p335_p0 }
  0x23   :  { %p338_p3 = pnand %p337_p2, %p331_p13 }
  0x25   :  { %341 = shalt.err (!%p338_p3)
}
  0x26   :  { %s388_s18 = smov [#allocation7]   ;;  %s342_s0 = scalar_lea.vmem %s54_s16, 16 }
  0x27   :  { %36 = dma.vmem_to_smem %s34_s13, 32, %s388_s18, [#allocation6]  }
  0x28   :  { %p343_p4 = scmp.ne.s32.totalorder %s54_s16, %s342_s0  ;;  %p347_p5 = scmp.lt.s32.totalorder %s54_s16, %s54_s16 }
  0x29   :  { %p348_p6 = scmp.lt.s32.totalorder %s342_s0, %s342_s0 }
  0x2b   :  { %p349_p7 = por %p348_p6, %p347_p5 }
  0x2d   :  { %p350_p8 = pnand %p349_p7, %p343_p4 }
  0x2f   :  { %353 = shalt.err (!%p350_p8)
}
  0x30   :  { %s389_s1 = smov [#allocation10]  }
  0x31   :  { %56 = dma.vmem_to_smem %s54_s16, 16, %s389_s1, [#allocation9]  }
  0x32   :  { %376 = dma.done.wait [#allocation4], 256  }
  0x33   :  { %377 = vsyncadd [#allocation4], 4294967040 }
  0x34   :  { %378 = dma.done.wait [#allocation6], 32  }
  0x35   :  { %379 = vsyncadd [#allocation6], 4294967264 }
  0x36   :  { %380 = dma.done.wait [#allocation9], 32  }
  0x37   :  { %381 = vsyncadd [#allocation9], 4294967264 }
  0x38   :  { %71 = sfence }
  0x39   :  { %s78_s3 = sld [smem:[#allocation7]]  ;;  %s251_s22 = sld [smem:[#allocation7 + $0x1]]  ;;  %v450_v0 = vld [vmem:[#allocation3] sm:$0xff]  ;;  %v452_v1 = vld [vmem:[#allocation3 + $0x8] sm:$0xff]  ;;  %v76_v9 = vstv %s590_s4 }
  0x3a   :  { %s250_s19 = sld [smem:[#allocation7 + $0x80]]  ;;  %s252_s23 = sld [smem:[#allocation7 + $0x81]] }
  0x3b   :  { %s442_s20 = sld [smem:[#allocation8]]  ;;  %s446_s24 = sld [smem:[#allocation8 + $0x1]] }
  0x3c   :  { %s444_s21 = sld [smem:[#allocation10]]  ;;  %s448_s25 = sld [smem:[#allocation10 + $0x1]] }
  0x3d   :  { %s454_s26 = sld [smem:[#allocation7 + $0x2]]  ;;  %s462_s29 = sld [smem:[#allocation7 + $0x3]] }
  0x3e   :  { %s456_s27 = sld [smem:[#allocation7 + $0x82]]  ;;  %s464_s30 = sld [smem:[#allocation7 + $0x83]] }
  0x3f   :  { %s458_s28 = sld [smem:[#allocation8 + $0x2]]  ;;  %v79_v2 = vstv %s78_s3  ;;  %s468_s6 = sld [smem:[#allocation8 + $0x3]]  ;;  %v94_v7 = vstv %s251_s22 }
  0x40   :  { %s460_s2 = sld [smem:[#allocation10 + $0x2]]  ;;  %v82_v3 = vstv %s250_s19  ;;  %v80_v4 = vmul.f32 %v79_v2, %v450_v0  ;;  %s470_s7 = sld [smem:[#allocation10 + $0x3]]  ;;  %v97_v8 = vstv %s252_s23  ;;  %v95_v11 = vmul.f32 %v94_v7, %v450_v0 }
  0x41   :  { %v83_v5 = vmul.f32 %v82_v3, %v452_v1  ;;  %v86_v6 = vstv %s442_s20  ;;  %s473_s8 = sld [smem:[#allocation7 + $0x4]]  ;;  %v98_v12 = vmul.f32 %v97_v8, %v452_v1  ;;  %v101_v14 = vstv %s446_s24  ;;  %s490_s14 = sld [smem:[#allocation7 + $0x5]] }
  0x42   :  { %s475_s9 = sld [smem:[#allocation7 + $0x84]]  ;;  %v90_v13 = vstv %s444_s21  ;;  %s492_s4 = sld [smem:[#allocation7 + $0x85]]  ;;  %v105_v21 = vstv %s448_s25 }
  0x43   :  { %v84_v10 = vadd.f32 %v83_v5, %v80_v4  ;;  %s482_s12 = sld [smem:[#allocation8 + $0x4]]  ;;  %v109_v15 = vstv %s454_s26  ;;  %v99_v18 = vadd.f32 %v98_v12, %v95_v11  ;;  %v124_v23 = vstv %s462_s29  ;;  %s500_s15 = sld [smem:[#allocation8 + $0x5]] }
  0x44   :  { %s484_s13 = sld [smem:[#allocation10 + $0x4]]  ;;  %v112_v16 = vstv %s456_s27  ;;  %v110_v19 = vmul.f32 %v109_v15, %v450_v0  ;;  %v127_v24 = vstv %s464_s30  ;;  %s502_s16 = sld [smem:[#allocation7 + $0x6]]  ;;  %v125_v28 = vmul.f32 %v124_v23, %v450_v0 }
  0x45   :  { %v87_v17 = vadd.f32 %v86_v6, %v84_v10  ;;  %v113_v20 = vmul.f32 %v112_v16, %v452_v1  ;;  %v116_v22 = vstv %s458_s28  ;;  %v102_v26 = vadd.f32 %v101_v14, %v99_v18  ;;  %s505_s17 = sld [smem:[#allocation7 + $0x86]]  ;;  %s511_s18 = sld [smem:[#allocation10 + $0x5]] }
  0x46   :  { %v120_v29 = vstv %s460_s2  ;;  %v128_v30 = vmul.f32 %v127_v24, %v452_v1  ;;  %v131_v31 = vstv %s468_s6  ;;  %s513_s0 = sld [smem:[#allocation8 + $0x6]]  ;;  %s516_s1 = sld [smem:[#allocation7 + $0x7]]  ;;  %v135_v38 = vstv %s470_s7 }
  0x47   :  { %v88_v25 = vmax.f32 %v87_v17, 0.0  ;;  %v114_v27 = vadd.f32 %v113_v20, %v110_v19  ;;  %v139_v32 = vstv %s473_s8  ;;  %v103_v34 = vmax.f32 %v102_v26, 0.0  ;;  %s518_s3 = sld [smem:[#allocation7 + $0x87]]  ;;  %s524_s19 = sld [smem:[#allocation10 + $0x6]] }
  0x48   :  { %v140_v36 = vmul.f32 %v139_v32, %v450_v0  ;;  %v129_v37 = vadd.f32 %v128_v30, %v125_v28  ;;  %v142_v39 = vstv %s475_s9  ;;  %s526_s20 = sld [smem:[#allocation8 + $0x7]]  ;;  %v154_v47 = vstv %s490_s14  ;;  %s531_s21 = sld [smem:[#allocation7 + $0x8]] }
  0x49   :  { %v91_v33 = vmul.f32 %v90_v13, %v88_v25  ;;  %v117_v35 = vadd.f32 %v116_v22, %v114_v27  ;;  %v146_v40 = vstv %s482_s12  ;;  %v106_v42 = vmul.f32 %v105_v21, %v103_v34  ;;  %s533_s22 = sld [smem:[#allocation7 + $0x88]]  ;;  %s539_s23 = sld [smem:[#allocation10 + $0x7]] }
  0x4a   :  { %v143_v44 = vmul.f32 %v142_v39, %v452_v1  ;;  %v132_v45 = vadd.f32 %v131_v31, %v129_v37  ;;  %v150_v46 = vstv %s484_s13  ;;  %v157_v48 = vstv %s492_s4  ;;  %s541_s24 = sld [smem:[#allocation8 + $0x8]]  ;;  %s545_s25 = sld [smem:[#allocation7 + $0x9]] }
  0x4b   :  { %v92_v41 = vadd.f32 %v91_v33, %v76_v9  ;;  %v118_v43 = vmax.f32 %v117_v35, 0.0  ;;  %v155_v52 = vmul.f32 %v154_v47, %v450_v0  ;;  %v158_v54 = vmul.f32 %v157_v48, %v452_v1  ;;  %s547_s26 = sld [smem:[#allocation7 + $0x89]]  ;;  %s557_s28 = sld [smem:[#allocation10 + $0x8]] }
  0x4c   :  { %v144_v51 = vadd.f32 %v143_v44, %v140_v36  ;;  %v133_v53 = vmax.f32 %v132_v45, 0.0  ;;  %v161_v55 = vstv %s500_s15  ;;  %v169_v56 = vstv %s502_s16  ;;  %s554_s27 = sld [smem:[#allocation8 + $0x9]]  ;;  %s390_s29 = smov [#allocation11]  }
  0x4d   :  { %v107_v49 = vadd.f32 %v106_v42, %v92_v41  ;;  %v121_v50 = vmul.f32 %v120_v29, %v118_v43  ;;  %v170_v59 = vmul.f32 %v169_v56, %v450_v0  ;;  %v172_v60 = vstv %s505_s17  ;;  %s286_s2 = sld [smem:[#allocation10 + $0x9]]  ;;  %s239_s30 = sshll.u32 %s390_s29, 4  ;;  %s240_s30 = int_to_ptr.vmem [resolvable:$true] %s239_s30 }
  0x4e   :  { %v147_v58 = vadd.f32 %v146_v40, %v144_v51  ;;  %v136_v61 = vmul.f32 %v135_v38, %v133_v53  ;;  %v159_v62 = vadd.f32 %v158_v54, %v155_v52  ;;  %v165_v63 = vstv %s511_s18  ;;  %s354_s6 = scalar_lea.vmem %s240_s30, 128  ;;  %p359_p10 = scmp.lt.s32.totalorder %s240_s30, %s240_s30 }
  0x4f   :  { %v122_v57 = vadd.f32 %v121_v50, %v107_v49  ;;  %v173_v2 = vmul.f32 %v172_v60, %v452_v1  ;;  %v176_v4 = vstv %s513_s0  ;;  %v184_v5 = vstv %s516_s1  ;;  %p355_p9 = scmp.ne.s32.totalorder %s240_s30, %s354_s6  ;;  %p360_p11 = scmp.lt.s32.totalorder %s354_s6, %s354_s6 }
  0x50   :  { %v148_v3 = vmax.f32 %v147_v58, 0.0  ;;  %v187_v6 = vstv %s518_s3  ;;  %v162_v8 = vadd.f32 %v161_v55, %v159_v62  ;;  %v185_v10 = vmul.f32 %v184_v5, %v450_v0 }
  0x51   :  { %v137_v7 = vadd.f32 %v136_v61, %v122_v57  ;;  %v174_v9 = vadd.f32 %v173_v2, %v170_v59  ;;  %v180_v12 = vstv %s524_s19  ;;  %v188_v13 = vmul.f32 %v187_v6, %v452_v1  ;;  %p361_p12 = por %p360_p11, %p359_p10 }
  0x52   :  { %v151_v11 = vmul.f32 %v150_v46, %v148_v3  ;;  %v191_v14 = vstv %s526_s20  ;;  %v163_v15 = vmax.f32 %v162_v8, 0.0  ;;  %v199_v17 = vstv %s531_s21 }
  0x53   :  { %v177_v16 = vadd.f32 %v176_v4, %v174_v9  ;;  %v202_v18 = vstv %s533_s22  ;;  %v189_v20 = vadd.f32 %v188_v13, %v185_v10  ;;  %v200_v21 = vmul.f32 %v199_v17, %v450_v0  ;;  %p362_p13 = pnand %p361_p12, %p355_p9 }
  0x54   :  { %v152_v19 = vadd.f32 %v151_v11, %v137_v7  ;;  %v203_v22 = vmul.f32 %v202_v18, %v452_v1  ;;  %v166_v23 = vmul.f32 %v165_v63, %v163_v15  ;;  %v195_v25 = vstv %s539_s23 }
  0x55   :  { %v178_v24 = vmax.f32 %v177_v16, 0.0  ;;  %v206_v26 = vstv %s541_s24  ;;  %v192_v27 = vadd.f32 %v191_v14, %v189_v20  ;;  %v214_v29 = vstv %s545_s25 }
  0x56   :  { %v204_v28 = vadd.f32 %v203_v22, %v200_v21  ;;  %v217_v30 = vstv %s547_s26  ;;  %v167_v31 = vadd.f32 %v166_v23, %v152_v19  ;;  %v215_v33 = vmul.f32 %v214_v29, %v450_v0 }
  0x57   :  { %v181_v32 = vmul.f32 %v180_v12, %v178_v24  ;;  %v218_v34 = vmul.f32 %v217_v30, %v452_v1  ;;  %v193_v35 = vmax.f32 %v192_v27, 0.0  ;;  %v221_v37 = vstv %s554_s27 }
  0x58   :  { %v207_v36 = vadd.f32 %v206_v26, %v204_v28  ;;  %v210_v39 = vstv %s557_s28  ;;  %v225_v46 = vstv %s286_s2 }
  0x59   :  { %v182_v38 = vadd.f32 %v181_v32, %v167_v31  ;;  %v219_v40 = vadd.f32 %v218_v34, %v215_v33  ;;  %v196_v41 = vmul.f32 %v195_v25, %v193_v35 }
  0x5a   :  { %v208_v42 = vmax.f32 %v207_v36, 0.0 }
  0x5b   :  { %v222_v43 = vadd.f32 %v221_v37, %v219_v40  ;;  %v197_v44 = vadd.f32 %v196_v41, %v182_v38 }
  0x5c   :  { %v211_v45 = vmul.f32 %v210_v39, %v208_v42 }
  0x5d   :  { %v223_v47 = vmax.f32 %v222_v43, 0.0 }
  0x5e   :  { %v212_v48 = vadd.f32 %v211_v45, %v197_v44 }
  0x5f   :  { %v226_v49 = vmul.f32 %v225_v46, %v223_v47 }
  0x61   :  { %v227_v50 = vadd.f32 %v226_v49, %v212_v48 }
  0x63   :  { %v228_v51 = vmul.f32 0.5, %v227_v50 }
  0x65   :  { %294 = vtanh.f32 %v228_v51 }
  0x6f   :  { %v295_v0 = vpop.eup %294 }
  0x70   :  { %v230_v1 = vmul.f32 0.5, %v295_v0 }
  0x72   :  { %v231_v52 = vadd.f32 0.5, %v230_v1 }
  0x74   :  { %232 = vst [vmem:[#allocation11] sm:$0xff] %v231_v52 }
  0x75   :  { %365 = shalt.err (!%p362_p13)
}
  0x76   :  { %s366_s9 = scalar_lea.hbm %s591_s5, 128 }
  0x77   :  { %p367_p0 = scmp.ne.s32.totalorder %s591_s5, %s366_s9  ;;  %p370_p1 = scmp.lt.u32.totalorder %s366_s9, %s591_s5 }
  0x79   :  { %p372_p2 = pnand %p370_p1, %p367_p0 }
  0x7b   :  { %375 = shalt.err (!%p372_p2)
}
  0x7c   :  { %242 = dma.vmem_to_hbm [thread:$0]  %s240_s30, 128, %s591_s5, [#allocation5]  }
  0x7d   :  { %382 = dma.done.wait [#allocation5], 128  }
  0x7e   :  { %383 = vsyncadd [#allocation5], 4294967168 }
  0x7f   :  { %246 = vsyncpa [#allocation4], 1 }
  0x80   :  { %247 = vsyncpa [#allocation5], 1 }
  0x81   :  { %248 = vsyncpa [#allocation6], 1 }
  0x82   :  { %249 = vsyncpa [#allocation9], 1 }

</bundles_post_ra>
